<compile_context>
chip_gen: v7x
topology: tpu7x:2x2x1
jax: 0.10.0
libtpu: 0.0.40
codegen_flags: <defaults>
</compile_context>

<pallas_src>
import jax
import jax.numpy as jnp
import numpy as np
from jax import lax
from jax.experimental import pallas as pl
from jax.experimental.pallas import tpu as pltpu

KH = KW = 3          # embedding conv kernel size
BN_EPS = 1e-5        # nn.BatchNorm2d default eps
LANE = 128           # TPU lane width


def _round_up(n, m):
    return ((n + m - 1) // m) * m


# ---------------------------------------------------------------------------
# Embedding branch: Conv2d(Cin, Cout, 3, stride=1, pad=0) + ReLU.
#
# Trick: flatten (H, W) -> H*W in the wrapper (free, contiguous).  In-kernel,
# the contribution of tap (di, dj) to output position (i, j) is read from the
# flat column  i*W + j + (di*W + dj), i.e. a *contiguous* shifted slice of the
# flat input.  Columns with j >= Wo wrap into garbage and are sliced away at
# the end.  The flat input is zero-padded by (max_off + Npad - H*W) columns so
# every shifted slice of the lane-dense width Npad stays in bounds.
# ---------------------------------------------------------------------------
def embedding_net(x, w, b):
    """SiameseNet.forward(x) / get_embedding(x)."""
    bsz, cin, h, wd = x.shape
    cout = w.shape[0]
    ho, wo = h - KH + 1, wd - KW + 1
    hw = h * wd
    nvalid = ho * wd                          # valid cols in W-padded layout
    npad = _round_up(nvalid, LANE)            # lane-dense store width
    max_off = (KH - 1) * wd + (KW - 1)
    hw_pad = max_off + npad                   # keeps all shifted slices in bounds

    x_flat = jnp.pad(x.reshape(bsz, cin, hw).astype(jnp.bfloat16),
                     ((0, 0), (0, 0), (0, hw_pad - hw)))
    # Per-tap weight matrices: w_taps[di*KW + dj] = w[:, :, di, dj]  -> (Cout, Cin)
    w_taps = jnp.transpose(w, (2, 3, 0, 1)).reshape(KH * KW, cout, cin)
    w_taps = w_taps.astype(jnp.bfloat16)
    b_col = b.reshape(cout, 1).astype(jnp.float32)

    def kernel(w_ref, b_ref, x_ref, o_ref):
        wt = w_ref[...]                                   # (9, Cout, Cin) resident
        acc = jnp.zeros((cout, npad), jnp.float32)
        for t in range(KH * KW):                          # unrolled: 9 MXU dots
            di, dj = divmod(t, KW)
            off = di * wd + dj
            acc = acc + jnp.dot(wt[t], x_ref[0, :, off:off + npad],
                                preferred_element_type=jnp.float32)
        o_ref[0] = jnp.maximum(acc + b_ref[...], 0.0)     # bias + ReLU on VPU

    out = pl.pallas_call(
        kernel,
        out_shape=jax.ShapeDtypeStruct((bsz, cout, npad), jnp.float32),
        grid=(bsz,),
        in_specs=[
            pl.BlockSpec((KH * KW, cout, cin), lambda bi: (0, 0, 0)),   # resident
            pl.BlockSpec((cout, 1), lambda bi: (0, 0)),                 # resident
            pl.BlockSpec((1, cin, hw_pad), lambda bi: (bi, 0, 0)),      # streamed
        ],
        out_specs=pl.BlockSpec((1, cout, npad), lambda bi: (bi, 0, 0)),
        compiler_params=pltpu.CompilerParams(
            dimension_semantics=("parallel",)),
    )(w_taps, b_col, x_flat)

    # Valid region: the first Wo columns of each of the Ho rows.
    return out[:, :, :nvalid].reshape(bsz, cout, ho, wd)[:, :, :, :wo]


# ---------------------------------------------------------------------------
# match_corr: per-batch cross-correlation (== F.conv2d(srch.view(1,B*C,H,W),
# ref, groups=B) + permute) followed by BatchNorm2d(1) in eval mode.
# Same shifted-slice accumulation trick: the (C, Hs*Ws) search embedding stays
# resident in VMEM and Hr*Wr (1,C)x(C,Npad) products are accumulated in f32.
# ---------------------------------------------------------------------------
def match_corr(embed_ref, embed_srch, bn_params):
    """bn_params: (4,) = [gamma, beta, running_mean, running_var] (eval mode)."""
    bsz, c, hr, wr = embed_ref.shape
    _, _, hs, ws = embed_srch.shape
    ho, wo = hs - hr + 1, ws - wr + 1
    taps = hr * wr
    hws = hs * ws
    nvalid = ho * ws
    npad = _round_up(nvalid, LANE)
    max_off = (hr - 1) * ws + (wr - 1)
    hws_pad = max_off + npad

    srch_flat = jnp.pad(embed_srch.reshape(bsz, c, hws).astype(jnp.bfloat16),
                        ((0, 0), (0, 0), (0, hws_pad - hws)))
    # Per-tap filter rows: ref_taps[b, di*Wr + dj, :] = embed_ref[b, :, di, dj]
    ref_taps = jnp.transpose(embed_ref, (0, 2, 3, 1)).reshape(bsz, taps, c)
    ref_taps = ref_taps.astype(jnp.bfloat16)

    # fold eval-mode BN(1) to two SMEM scalars: y = x*scale + shift
    gamma, beta, mean, var = bn_params[0], bn_params[1], bn_params[2], bn_params[3]
    scale = gamma * lax.rsqrt(var + BN_EPS)
    shift = beta - mean * scale
    bn_ss = jnp.stack([scale, shift]).astype(jnp.float32)      # (2,)

    def kernel(r_ref, s_ref, bn_ref, o_ref):
        acc = jnp.zeros((1, npad), jnp.float32)
        for t in range(taps):                                  # unrolled Hr*Wr dots
            di, dj = divmod(t, wr)
            off = di * ws + dj
            acc = acc + jnp.dot(r_ref[0, t:t + 1, :], s_ref[0, :, off:off + npad],
                                preferred_element_type=jnp.float32)
        o_ref[0] = acc * bn_ref[0] + bn_ref[1]                 # folded BN(1)

    out = pl.pallas_call(
        kernel,
        out_shape=jax.ShapeDtypeStruct((bsz, 1, npad), jnp.float32),
        grid=(bsz,),
        in_specs=[
            pl.BlockSpec((1, taps, c), lambda bi: (bi, 0, 0)),
            pl.BlockSpec((1, c, hws_pad), lambda bi: (bi, 0, 0)),
            pl.BlockSpec(memory_space=pltpu.MemorySpace.SMEM),
        ],
        out_specs=pl.BlockSpec((1, 1, npad), lambda bi: (bi, 0, 0)),
        compiler_params=pltpu.CompilerParams(
            dimension_semantics=("parallel",)),
    )(ref_taps, srch_flat, bn_ss)

    # TODO(synk): upscale=True (bilinear F.interpolate) not implemented.
    return out[:, :, :nvalid].reshape(bsz, 1, ho, ws)[:, :, :, :wo]


# ---------------------------------------------------------------------------
# Pure-JAX references (correctness checks only).
# ---------------------------------------------------------------------------
def _embedding_ref(x, w, b):
    y = lax.conv_general_dilated(
        x, w, (1, 1), "VALID",
        dimension_numbers=("NCHW", "OIHW", "NCHW"),
        precision=lax.Precision.HIGHEST)
    return jnp.maximum(y + b.reshape(1, -1, 1, 1), 0.0)


def _match_corr_ref(eref, esrch, bn):
    outs = [
        lax.conv_general_dilated(
            esrch[i:i + 1], eref[i:i + 1], (1, 1), "VALID",
            dimension_numbers=("NCHW", "OIHW", "NCHW"),
            precision=lax.Precision.HIGHEST)
        for i in range(eref.shape[0])
    ]
    mm = jnp.concatenate(outs, 0)                                # (B, 1, Ho, Wo)
    gamma, beta, mean, var = bn[0], bn[1], bn[2], bn[3]
    return (mm - mean) * lax.rsqrt(var + BN_EPS) * gamma + beta


if __name__ == "__main__":
    key = jax.random.PRNGKey(0)
    k1, k2, k3, k4 = jax.random.split(key, 4)

    B, CIN, CEMB = 2, 4, 8
    # exemplar (reference) image and search image, NCHW
    x_ref_img = jax.random.normal(k1, (B, CIN, 8, 8), jnp.float32)
    x_srch_img = jax.random.normal(k2, (B, CIN, 16, 16), jnp.float32)

    # deterministic "embedding_net" params (Conv2d weight/bias)
    w = 0.1 * jax.random.normal(k3, (CEMB, CIN, KH, KW), jnp.float32)
    b = 0.1 * jax.random.normal(k4, (CEMB,), jnp.float32)

    # BatchNorm2d(1) eval-mode params: [gamma, beta, running_mean, running_var]
    bn_params = jnp.array([1.0, 0.0, 0.0, 1.0], jnp.float32)

    emb_ref = embedding_net(x_ref_img, w, b)       # forward() on the exemplar
    emb_srch = embedding_net(x_srch_img, w, b)     # forward() on the search image
    match_map = match_corr(emb_ref, emb_srch, bn_params)
    jax.block_until_ready(match_map)

    assert emb_ref.shape == (B, CEMB, 6, 6)
    assert emb_srch.shape == (B, CEMB, 14, 14)
    assert match_map.shape == (B, 1, 9, 9)

    # correctness vs pure-JAX HIGHEST-precision f32 references.  Tolerance
    # 2e-2 covers the deliberate bf16 cast of MXU operands (f32 accumulation).
    np.testing.assert_allclose(
        np.asarray(emb_ref), np.asarray(_embedding_ref(x_ref_img, w, b)),
        rtol=2e-2, atol=2e-2)
    np.testing.assert_allclose(
        np.asarray(emb_srch), np.asarray(_embedding_ref(x_srch_img, w, b)),
        rtol=2e-2, atol=2e-2)
    np.testing.assert_allclose(
        np.asarray(match_map),
        np.asarray(_match_corr_ref(emb_ref, emb_srch, bn_params)),
        rtol=2e-2, atol=2e-2)

    print("KERNEL_OK")
</pallas_src>

<mosaic_0001>
module attributes {stable_mosaic.version = 11 : i64} {
  func.func @kernel(%arg0: i32, %arg1: memref<9x8x4xbf16, #tpu.memory_space<vmem>>, %arg2: memref<8x1xf32, #tpu.memory_space<vmem>>, %arg3: memref<1x4x146xbf16, #tpu.memory_space<vmem>>, %arg4: memref<1x8x128xf32, #tpu.memory_space<vmem>>) attributes {dimension_semantics = [#tpu.dimension_semantics<parallel>], iteration_bounds = array<i64: 2>, scalar_prefetch = 0 : i64, scratch_operands = 0 : i64, tpu.core_type = #tpu.core_type<tc>, window_params = [{pipeline_mode = #tpu.pipeline_mode<synchronous>, transform_indices = @transform_0, window_bounds = array<i64: 9, 8, 4>}, {pipeline_mode = #tpu.pipeline_mode<synchronous>, transform_indices = @transform_1, window_bounds = array<i64: 8, 1>}, {transform_indices = @transform_2, window_bounds = array<i64: 1, 4, 146>}, {transform_indices = @transform_3, window_bounds = array<i64: 1, 8, 128>}]} {
    %c0 = arith.constant 0 : index
    %c0_0 = arith.constant 0 : index
    %c0_1 = arith.constant 0 : index
    %0 = vector.load %arg1[%c0, %c0_0, %c0_1] : memref<9x8x4xbf16, #tpu.memory_space<vmem>>, vector<9x8x4xbf16>
    %cst = arith.constant 0.000000e+00 : f32
    %1 = vector.broadcast %cst : f32 to vector<8x128xf32>
    %2 = vector.extract_strided_slice %0 {offsets = [0, 0, 0], sizes = [1, 8, 4], strides = [1, 1, 1]} : vector<9x8x4xbf16> to vector<1x8x4xbf16>
    %3 = vector.shape_cast %2 : vector<1x8x4xbf16> to vector<8x4xbf16>
    %c0_2 = arith.constant 0 : index
    %c0_3 = arith.constant 0 : index
    %c0_4 = arith.constant 0 : index
    %4 = vector.load %arg3[%c0_2, %c0_3, %c0_4] : memref<1x4x146xbf16, #tpu.memory_space<vmem>>, vector<1x4x128xbf16>
    %5 = vector.shape_cast %4 : vector<1x4x128xbf16> to vector<4x128xbf16>
    %cst_5 = arith.constant dense<0.000000e+00> : vector<8x128xf32>
    %6 = tpu.matmul %3, %5, %cst_5 {dimension_numbers = #tpu.dot_dimension_numbers<[1], [0], [0], [1], [0, 0, 1, 1], [], []>} : vector<8x4xbf16>, vector<4x128xbf16>, vector<8x128xf32> -> vector<8x128xf32>
    %7 = arith.addf %1, %6 : vector<8x128xf32>
    %8 = vector.extract_strided_slice %0 {offsets = [1, 0, 0], sizes = [1, 8, 4], strides = [1, 1, 1]} : vector<9x8x4xbf16> to vector<1x8x4xbf16>
    %9 = vector.shape_cast %8 : vector<1x8x4xbf16> to vector<8x4xbf16>
    %c0_6 = arith.constant 0 : index
    %c0_7 = arith.constant 0 : index
    %c1 = arith.constant 1 : index
    %10 = vector.load %arg3[%c0_6, %c0_7, %c1] : memref<1x4x146xbf16, #tpu.memory_space<vmem>>, vector<1x4x128xbf16>
    %11 = vector.shape_cast %10 : vector<1x4x128xbf16> to vector<4x128xbf16>
    %cst_8 = arith.constant dense<0.000000e+00> : vector<8x128xf32>
    %12 = tpu.matmul %9, %11, %cst_8 {dimension_numbers = #tpu.dot_dimension_numbers<[1], [0], [0], [1], [0, 0, 1, 1], [], []>} : vector<8x4xbf16>, vector<4x128xbf16>, vector<8x128xf32> -> vector<8x128xf32>
    %13 = arith.addf %7, %12 : vector<8x128xf32>
    %14 = vector.extract_strided_slice %0 {offsets = [2, 0, 0], sizes = [1, 8, 4], strides = [1, 1, 1]} : vector<9x8x4xbf16> to vector<1x8x4xbf16>
    %15 = vector.shape_cast %14 : vector<1x8x4xbf16> to vector<8x4xbf16>
    %c0_9 = arith.constant 0 : index
    %c0_10 = arith.constant 0 : index
    %c2 = arith.constant 2 : index
    %16 = vector.load %arg3[%c0_9, %c0_10, %c2] : memref<1x4x146xbf16, #tpu.memory_space<vmem>>, vector<1x4x128xbf16>
    %17 = vector.shape_cast %16 : vector<1x4x128xbf16> to vector<4x128xbf16>
    %cst_11 = arith.constant dense<0.000000e+00> : vector<8x128xf32>
    %18 = tpu.matmul %15, %17, %cst_11 {dimension_numbers = #tpu.dot_dimension_numbers<[1], [0], [0], [1], [0, 0, 1, 1], [], []>} : vector<8x4xbf16>, vector<4x128xbf16>, vector<8x128xf32> -> vector<8x128xf32>
    %19 = arith.addf %13, %18 : vector<8x128xf32>
    %20 = vector.extract_strided_slice %0 {offsets = [3, 0, 0], sizes = [1, 8, 4], strides = [1, 1, 1]} : vector<9x8x4xbf16> to vector<1x8x4xbf16>
    %21 = vector.shape_cast %20 : vector<1x8x4xbf16> to vector<8x4xbf16>
    %c0_12 = arith.constant 0 : index
    %c0_13 = arith.constant 0 : index
    %c8 = arith.constant 8 : index
    %22 = vector.load %arg3[%c0_12, %c0_13, %c8] : memref<1x4x146xbf16, #tpu.memory_space<vmem>>, vector<1x4x128xbf16>
    %23 = vector.shape_cast %22 : vector<1x4x128xbf16> to vector<4x128xbf16>
    %cst_14 = arith.constant dense<0.000000e+00> : vector<8x128xf32>
    %24 = tpu.matmul %21, %23, %cst_14 {dimension_numbers = #tpu.dot_dimension_numbers<[1], [0], [0], [1], [0, 0, 1, 1], [], []>} : vector<8x4xbf16>, vector<4x128xbf16>, vector<8x128xf32> -> vector<8x128xf32>
    %25 = arith.addf %19, %24 : vector<8x128xf32>
    %26 = vector.extract_strided_slice %0 {offsets = [4, 0, 0], sizes = [1, 8, 4], strides = [1, 1, 1]} : vector<9x8x4xbf16> to vector<1x8x4xbf16>
    %27 = vector.shape_cast %26 : vector<1x8x4xbf16> to vector<8x4xbf16>
    %c0_15 = arith.constant 0 : index
    %c0_16 = arith.constant 0 : index
    %c9 = arith.constant 9 : index
    %28 = vector.load %arg3[%c0_15, %c0_16, %c9] : memref<1x4x146xbf16, #tpu.memory_space<vmem>>, vector<1x4x128xbf16>
    %29 = vector.shape_cast %28 : vector<1x4x128xbf16> to vector<4x128xbf16>
    %cst_17 = arith.constant dense<0.000000e+00> : vector<8x128xf32>
    %30 = tpu.matmul %27, %29, %cst_17 {dimension_numbers = #tpu.dot_dimension_numbers<[1], [0], [0], [1], [0, 0, 1, 1], [], []>} : vector<8x4xbf16>, vector<4x128xbf16>, vector<8x128xf32> -> vector<8x128xf32>
    %31 = arith.addf %25, %30 : vector<8x128xf32>
    %32 = vector.extract_strided_slice %0 {offsets = [5, 0, 0], sizes = [1, 8, 4], strides = [1, 1, 1]} : vector<9x8x4xbf16> to vector<1x8x4xbf16>
    %33 = vector.shape_cast %32 : vector<1x8x4xbf16> to vector<8x4xbf16>
    %c0_18 = arith.constant 0 : index
    %c0_19 = arith.constant 0 : index
    %c10 = arith.constant 10 : index
    %34 = vector.load %arg3[%c0_18, %c0_19, %c10] : memref<1x4x146xbf16, #tpu.memory_space<vmem>>, vector<1x4x128xbf16>
    %35 = vector.shape_cast %34 : vector<1x4x128xbf16> to vector<4x128xbf16>
    %cst_20 = arith.constant dense<0.000000e+00> : vector<8x128xf32>
    %36 = tpu.matmul %33, %35, %cst_20 {dimension_numbers = #tpu.dot_dimension_numbers<[1], [0], [0], [1], [0, 0, 1, 1], [], []>} : vector<8x4xbf16>, vector<4x128xbf16>, vector<8x128xf32> -> vector<8x128xf32>
    %37 = arith.addf %31, %36 : vector<8x128xf32>
    %38 = vector.extract_strided_slice %0 {offsets = [6, 0, 0], sizes = [1, 8, 4], strides = [1, 1, 1]} : vector<9x8x4xbf16> to vector<1x8x4xbf16>
    %39 = vector.shape_cast %38 : vector<1x8x4xbf16> to vector<8x4xbf16>
    %c0_21 = arith.constant 0 : index
    %c0_22 = arith.constant 0 : index
    %c16 = arith.constant 16 : index
    %40 = vector.load %arg3[%c0_21, %c0_22, %c16] : memref<1x4x146xbf16, #tpu.memory_space<vmem>>, vector<1x4x128xbf16>
    %41 = vector.shape_cast %40 : vector<1x4x128xbf16> to vector<4x128xbf16>
    %cst_23 = arith.constant dense<0.000000e+00> : vector<8x128xf32>
    %42 = tpu.matmul %39, %41, %cst_23 {dimension_numbers = #tpu.dot_dimension_numbers<[1], [0], [0], [1], [0, 0, 1, 1], [], []>} : vector<8x4xbf16>, vector<4x128xbf16>, vector<8x128xf32> -> vector<8x128xf32>
    %43 = arith.addf %37, %42 : vector<8x128xf32>
    %44 = vector.extract_strided_slice %0 {offsets = [7, 0, 0], sizes = [1, 8, 4], strides = [1, 1, 1]} : vector<9x8x4xbf16> to vector<1x8x4xbf16>
    %45 = vector.shape_cast %44 : vector<1x8x4xbf16> to vector<8x4xbf16>
    %c0_24 = arith.constant 0 : index
    %c0_25 = arith.constant 0 : index
    %c17 = arith.constant 17 : index
    %46 = vector.load %arg3[%c0_24, %c0_25, %c17] : memref<1x4x146xbf16, #tpu.memory_space<vmem>>, vector<1x4x128xbf16>
    %47 = vector.shape_cast %46 : vector<1x4x128xbf16> to vector<4x128xbf16>
    %cst_26 = arith.constant dense<0.000000e+00> : vector<8x128xf32>
    %48 = tpu.matmul %45, %47, %cst_26 {dimension_numbers = #tpu.dot_dimension_numbers<[1], [0], [0], [1], [0, 0, 1, 1], [], []>} : vector<8x4xbf16>, vector<4x128xbf16>, vector<8x128xf32> -> vector<8x128xf32>
    %49 = arith.addf %43, %48 : vector<8x128xf32>
    %50 = vector.extract_strided_slice %0 {offsets = [8, 0, 0], sizes = [1, 8, 4], strides = [1, 1, 1]} : vector<9x8x4xbf16> to vector<1x8x4xbf16>
    %51 = vector.shape_cast %50 : vector<1x8x4xbf16> to vector<8x4xbf16>
    %c0_27 = arith.constant 0 : index
    %c0_28 = arith.constant 0 : index
    %c18 = arith.constant 18 : index
    %52 = vector.load %arg3[%c0_27, %c0_28, %c18] : memref<1x4x146xbf16, #tpu.memory_space<vmem>>, vector<1x4x128xbf16>
    %53 = vector.shape_cast %52 : vector<1x4x128xbf16> to vector<4x128xbf16>
    %cst_29 = arith.constant dense<0.000000e+00> : vector<8x128xf32>
    %54 = tpu.matmul %51, %53, %cst_29 {dimension_numbers = #tpu.dot_dimension_numbers<[1], [0], [0], [1], [0, 0, 1, 1], [], []>} : vector<8x4xbf16>, vector<4x128xbf16>, vector<8x128xf32> -> vector<8x128xf32>
    %55 = arith.addf %49, %54 : vector<8x128xf32>
    %c0_30 = arith.constant 0 : index
    %c0_31 = arith.constant 0 : index
    %56 = vector.load %arg2[%c0_30, %c0_31] : memref<8x1xf32, #tpu.memory_space<vmem>>, vector<8x1xf32>
    %57 = vector.broadcast %56 : vector<8x1xf32> to vector<8x128xf32>
    %58 = arith.addf %55, %57 : vector<8x128xf32>
    %cst_32 = arith.constant 0.000000e+00 : f32
    %59 = vector.broadcast %cst_32 : f32 to vector<8x128xf32>
    %60 = arith.maximumf %58, %59 : vector<8x128xf32>
    %c0_33 = arith.constant 0 : index
    %c0_34 = arith.constant 0 : index
    %c0_35 = arith.constant 0 : index
    %61 = vector.load %arg4[%c0_33, %c0_34, %c0_35] : memref<1x8x128xf32, #tpu.memory_space<vmem>>, vector<1x8x128xf32>
    %62 = vector.shape_cast %61 : vector<1x8x128xf32> to vector<8x128xf32>
    %63 = vector.shape_cast %60 : vector<8x128xf32> to vector<1x8x128xf32>
    tpu.vector_store %arg4[%c0_33, %c0_34, %c0_35], %63 {strides = array<i32>} : memref<1x8x128xf32, #tpu.memory_space<vmem>>, vector<1x8x128xf32>,
    return
  }
  func.func @transform_0(%arg0: i32) -> (i32, i32, i32) {
    %c0_i32 = arith.constant 0 : i32
    %c0_i32_0 = arith.constant 0 : i32
    %c0_i32_1 = arith.constant 0 : i32
    %c0_i32_2 = arith.constant 0 : i32
    return %c0_i32, %c0_i32_0, %c0_i32_1 : i32, i32, i32
  }
  func.func @transform_1(%arg0: i32) -> (i32, i32) {
    %c0_i32 = arith.constant 0 : i32
    %c0_i32_0 = arith.constant 0 : i32
    %c0_i32_1 = arith.constant 0 : i32
    return %c0_i32, %c0_i32_0 : i32, i32
  }
  func.func @transform_2(%arg0: i32) -> (i32, i32, i32) {
    %c0_i32 = arith.constant 0 : i32
    %c0_i32_0 = arith.constant 0 : i32
    %c0_i32_1 = arith.constant 0 : i32
    return %arg0, %c0_i32, %c0_i32_0 : i32, i32, i32
  }
  func.func @transform_3(%arg0: i32) -> (i32, i32, i32) {
    %c0_i32 = arith.constant 0 : i32
    %c0_i32_0 = arith.constant 0 : i32
    %c0_i32_1 = arith.constant 0 : i32
    return %arg0, %c0_i32, %c0_i32_0 : i32, i32, i32
  }
}

</mosaic_0001>

<bundles_post_ra>
// kernel: tpu_custom_call.1
= control target key start
LH: loop header
LB: loop body
LE: loop exit
PB: predicated region body
PF: predicated region fallthrough
CT: control target
= control target key end

     0   :  { %8 = vsyncpa [#allocation3], 0  ;;  %s1236_s0 = inlined_call_operand.vmem [shape: bf16[9,8,4], index: 0, kind: input, shape index: {}]   ;;  %s1237_s1 = inlined_call_operand.vmem [shape: f32[8,1], index: 1, kind: input, shape index: {}]   ;;  %s1238_s2 = inlined_call_operand.vmem [shape: bf16[2,4,146], index: 2, kind: input, shape index: {}]   ;;  %s1239_s3 = inlined_call_operand.hbm [shape: f32[2,8,128], index: 3, kind: output, shape index: {}]  }
   0x1   :  { %10 = vsyncpa [#allocation3 + $0x1], 0  ;;  %s1061_s12 = smov 0   ;;  %s1063_s13 = smov 0  }
   0x2   :  { %s1065_s14 = smov 0   ;;  %s1067_s15 = smov 0  }
   0x3 LB: > { %s1082_s16 = sadd.s32 4294967295, %s1027_s15   ;;  %s813_s17 = sadd.s32 4294967294, %s1027_s15   ;;  %s1027_s15 = sphi %s1067_s15, %s1245_s15   ;;  %s1023_s14 = sphi %s1065_s14, %s1244_s14   ;;  %s1019_s13 = sphi %s1063_s13, %s1243_s13   ;;  %s1015_s12 = sphi %s1061_s12, %s1242_s12  }
   0x4   : > { %s1086_s18 = sadd.s32 1, %s1027_s15   ;;  %s91_s19 = sadd.s32 1, %s1023_s14 }
   0x5   : > { %s88_s20 = ssub.s32 %s1027_s15, %s1086_s18  ;;  %p101_p0 = scmp.ne.s32.totalorder %s1023_s14, %s1019_s13 }
   0x6   : > { %p89_p1 = scmp.eq.s32.totalorder %s88_s20, 0  ;;  %p102_p2 = scmp.eq.s32.totalorder %s1082_s16, 1 }
   0x7   : > { %p107_p3 = scmp.ne.s32.totalorder %s1019_s13, %s1015_s12  ;;  %p108_p4 = scmp.eq.s32.totalorder %s813_s17, 1 }
   0x8   : > { %s1097_s21 = scalar_select %p89_p1, %s1023_s14, %s91_s19  }
   0x9   : > { %p1099_p5 = por %p102_p2, %p101_p0  ;;  %p1103_p6 = por %p108_p4, %p107_p3 }
   0xa   : > { %p816_p7 = scmp.ge.s32.totalorder %s1027_s15, 1  ;;  %p140_p8 = scmp.lt.s32.totalorder %s1027_s15, 3 }
   0xc   : > { %p141_p9 = pnand %p816_p7, %p140_p8 }
   0xd   : > { %p164_p10 = scmp.lt.s32.totalorder (!%p141_p9), %s1082_s16, 1  ;;  %v1029_v0 = vmov (!%p141_p9), 0.0   ;;  %vm1030_vm0 = vmmov (!%p141_p9), 0   ;;  %vm200_vm1 = vcmask (!%p141_p9), 1041408   ;;  %s1031_s29 = smov (!%p141_p9), 126   ;;  %vm196_vm2 = vcmask (!%p141_p9), 31744  }
   0xe   : > { %144 = sbr.rel (%p141_p9) target bundleno = 414 (0x19e), region = 32  ;;  %860 = vmatprep.subr.bf16.mxu0 (!%p141_p9), %v1029_v0  ;;  %866 = vmatprep.subr.bf16.mxu1 (!%p141_p9), %v1029_v0  ;;  %s1032_s30 = smov (!%p141_p9), 127   ;;  %v170_v5 = vld [vmem:[%s1236_s0] sm:$0xf] (!%p141_p9)  ;;  %v1039_v6 = vmov (!%p141_p9), 0   ;;  %vm304_vm3 = vcmask (!%p141_p9), 1031168  }
   0xf   : > { %862 = vmatprep.mubr.msk.bf16.mxu0 (!%p141_p9), %vm1030_vm0, %v1029_v0  ;;  %868 = vmatprep.mubr.msk.bf16.mxu1 (!%p141_p9), %vm1030_vm0, %v1029_v0  ;;  %s1033_s6 = smov (!%p141_p9), 120   ;;  %s1034_s7 = smov (!%p141_p9), 119   ;;  %v731_v7 = vld [vmem:[%s1237_s1] sm:$0xff] (!%p141_p9)  ;;  %vm194_vm4 = vcmask (!%p141_p9), 1039360   ;;  %vm367_vm5 = vcmask (!%p141_p9), 982016   ;;  %vm430_vm6 = vcmask (!%p141_p9), 973824  }
  0x10   : > { %s1035_s8 = smov (!%p141_p9), 118   ;;  %s1036_s9 = smov (!%p141_p9), 112   ;;  %964 = vset.pattern.permute.xlu0 (!%p141_p9), %v1039_v6  ;;  %v171_v15 = vld [vmem:[%s1236_s0 + $0x4] sm:$0xf] (!%p141_p9)  ;;  %v173_v21 = vld [vmem:[%s1236_s0 + $0xc] sm:$0xf] (!%p141_p9) }
  0x11   : > { %s1037_s10 = smov (!%p141_p9), 111   ;;  %s1038_s11 = smov (!%p141_p9), 110   ;;  %vm493_vm7 = vcmask (!%p141_p9), 965632   ;;  %v172_v25 = vld [vmem:[%s1236_s0 + $0x8] sm:$0xf] (!%p141_p9)  ;;  %vm556_vm8 = vcmask (!%p141_p9), 916480  }
  0x12   : > { %v175_v31 = vld [vmem:[%s1236_s0 + $0x14] sm:$0xf] (!%p141_p9)  ;;  %vm619_vm9 = vcmask (!%p141_p9), 908288   ;;  %v174_v35 = vld [vmem:[%s1236_s0 + $0x10] sm:$0xf] (!%p141_p9)  ;;  %vm682_vm10 = vcmask (!%p141_p9), 900096  }
  0x13   : > { %v177_v41 = vld [vmem:[%s1236_s0 + $0x1c] sm:$0xf] (!%p141_p9)  ;;  %v176_v45 = vld [vmem:[%s1236_s0 + $0x18] sm:$0xf] (!%p141_p9)  ;;  %v178_v47 = vld [vmem:[%s1236_s0 + $0x20] sm:$0xf] (!%p141_p9) }
  0x14   : > { %s161_s17 = sand.u32 (!%p141_p9), 1, %s1019_s13   ;;  %s838_s20 = sshll.u32 (!%p141_p9), %s1082_s16, 7 }
  0x15   : > { %s165_s24 = scalar_select %p164_p10, %s1082_s16, 1 }
  0x16   : > { %s817_s19 = sshll.u32 %s161_s17, 3  ;;  %s1040_s16 = smov [#allocation2]  }
  0x17   : > { %s841_s25 = sshll.u32 %s165_s24, 2  ;;  %s163_s24 = scalar_lea.vmem [#allocation2], %s817_s19 }
  0x18   : > { %s168_s28 = scalar_lea.vmem %s1238_s2, %s841_s25  ;;  %s754_s25 = sshll.u32 %s163_s24, 4  ;;  %s1196_s25 = int_to_ptr.vmem [resolvable:$true] %s754_s25 }
  0x19   : > { %v823_v1 = vld.sshfl [vmem:[%s168_s28] sm:$0x33 pattern:$0x76325410]  ;;  %s969_s4 = sshll.u32 %s1040_s16, 4  ;;  %s970_s4 = int_to_ptr.vmem [resolvable:$false] %s969_s4 }
  0x1a   : > { %300 = vrot.lane.b32.xlu1 %v823_v1, %s1031_s29  ;;  %v299_v2 = vcombine.high %v823_v1, %v823_v1  ;;  %190 = vrot.lane.b32.xlu0 %v823_v1, %s1032_s30  ;;  %v179_v3 = vld [vmem:[%s168_s28] sm:$0x3]  ;;  %s1194_s28 = scalar_lea.hbm %s1239_s3, %s838_s20  ;;  %s971_s5 = scalar_lea.vmem %s970_s4, 256 }
  0x1b   : > { %v248_v4 = vsel %vm200_vm1, %v179_v3, 0  ;;  %p972_p0 = scmp.lt.s32.totalorder %s1196_s25, %s970_s4 }
  0x1c   : > { %867 = vmatpush3.bf16.msra.mxu1 %v248_v4 }
  0x1d   : > { %878 = vmatprep.subr.bf16.mxu1 %v1029_v0 }
  0x1e   : > { %302 = vrot.lane.b32.xlu1 %v299_v2, %s1031_s29  ;;  %192 = vrot.lane.b32.xlu0 %v299_v2, %s1032_s30  ;;  %s741_s29 = scalar_lea.sflag [#allocation3], %s161_s17  ;;  %s965_s30 = scalar_lea.vmem %s1196_s25, 128 }
  0x1f   : > { %869 = vmatmul.mubr.msk.bf16.vlgmr.msra.gmra.mrb[0].mxu1 %vm196_vm2, %v170_v5  ;;  %p966_p11 = scmp.ne.s32.totalorder %s1196_s25, %s965_s30  ;;  %p973_p1 = scmp.lt.s32.totalorder %s971_s5, %s965_s30 }
  0x20   : > { %880 = vmatprep.mubr.msk.bf16.mxu1 %vm1030_vm0, %v1029_v0 }
  0x21   : > { %p967_p12 = pnand %p966_p11, %p1099_p5  ;;  %p974_p2 = por %p973_p1, %p972_p0 }
  0x22   : > { %365 = vrot.lane.b32.xlu1 %v299_v2, %s1033_s6  ;;  %363 = vrot.lane.b32.xlu0 %v823_v1, %s1033_s6 }
  0x23   : > { %p968_p13 = pneg %p967_p12 }
  0x25   : > { %p975_p3 = pnand %p974_p2, %p968_p13 }
  0x26   : > { %428 = vrot.lane.b32.xlu1 %v299_v2, %s1034_s7  ;;  %426 = vrot.lane.b32.xlu0 %v823_v1, %s1034_s7 }
  0x2a   : > { %491 = vrot.lane.b32.xlu1 %v299_v2, %s1035_s8  ;;  %489 = vrot.lane.b32.xlu0 %v823_v1, %s1035_s8 }
  0x2e   : > { %554 = vrot.lane.b32.xlu1 %v299_v2, %s1036_s9  ;;  %552 = vrot.lane.b32.xlu0 %v823_v1, %s1036_s9 }
  0x32   : > { %617 = vrot.lane.b32.xlu1 %v299_v2, %s1037_s10  ;;  %615 = vrot.lane.b32.xlu0 %v823_v1, %s1037_s10 }
  0x36   : > { %680 = vrot.lane.b32.xlu1 %v299_v2, %s1038_s11  ;;  %678 = vrot.lane.b32.xlu0 %v823_v1, %s1038_s11 }
  0x3a   : > { %734 = vperm.xlu0 %964, %v731_v7  }
  0x8c   : > { %v301_v8 = vpop.permute.xlu1 %300  ;;  %v191_v9 = vpop.permute.xlu0 %190 }
  0x90   : > { %v303_v10 = vpop.permute.xlu1 %302  ;;  %v193_v11 = vpop.permute.xlu0 %192 }
  0x91   : > { %v305_v12 = vsel %vm304_vm3, %v301_v8, %v303_v10  ;;  %v195_v13 = vsel %vm194_vm4, %v191_v9, %v193_v11 }
  0x92   : > { %v202_v14 = vsel %vm200_vm1, %v195_v13, 0  ;;  %v310_v16 = vsel %vm200_vm1, %v305_v12, 0 }
  0x93   : > { %861 = vmatpush3.bf16.msra.mxu0 %v202_v14 }
  0x94   : > { %872 = vmatprep.subr.bf16.mxu0 %v1029_v0  ;;  %v366_v17 = vpop.permute.xlu1 %365  ;;  %v364_v18 = vpop.permute.xlu0 %363 }
  0x95   : > { %v368_v19 = vsel %vm367_vm5, %v364_v18, %v366_v17 }
  0x96   : > { %863 = vmatmul.mubr.msk.bf16.vlgmr.msra.gmra.mrb[0].mxu0 %vm196_vm2, %v171_v15  ;;  %v373_v20 = vsel %vm200_vm1, %v368_v19, 0 }
  0x97   : > { %873 = vmatpush3.bf16.msra.mxu0 %v310_v16  ;;  %879 = vmatpush3.bf16.msra.mxu1 %v373_v20 }
  0x98   : > { %v429_v22 = vpop.permute.xlu1 %428  ;;  %v427_v23 = vpop.permute.xlu0 %426  ;;  %874 = vmatprep.mubr.msk.bf16.mxu0 %vm1030_vm0, %v1029_v0  ;;  %884 = vmatprep.subr.bf16.mxu0 %v1029_v0 }
  0x99   : > { %v431_v24 = vsel %vm430_vm6, %v427_v23, %v429_v22  ;;  %890 = vmatprep.subr.bf16.mxu1 %v1029_v0 }
  0x9a   : > { %881 = vmatmul.mubr.msk.bf16.vlgmr.msra.gmra.mrb[4].mxu1 %vm196_vm2, %v173_v21  ;;  %v436_v26 = vsel %vm200_vm1, %v431_v24, 0 }
  0x9b   : > { %892 = vmatprep.mubr.msk.bf16.mxu1 %vm1030_vm0, %v1029_v0 }
  0x9c   : > { %v492_v27 = vpop.permute.xlu1 %491  ;;  %v490_v28 = vpop.permute.xlu0 %489 }
  0x9d   : > { %v494_v29 = vsel %vm493_vm7, %v490_v28, %v492_v27 }
  0x9e   : > { %875 = vmatmul.mubr.msk.bf16.vlgmr.msra.gmra.mrb[4].mxu0 %vm196_vm2, %v172_v25  ;;  %v499_v30 = vsel %vm200_vm1, %v494_v29, 0 }
  0x9f   : > { %885 = vmatpush3.bf16.msra.mxu0 %v436_v26  ;;  %891 = vmatpush3.bf16.msra.mxu1 %v499_v30 }
  0xa0   : > { %v555_v32 = vpop.permute.xlu1 %554  ;;  %v553_v33 = vpop.permute.xlu0 %552  ;;  %886 = vmatprep.mubr.msk.bf16.mxu0 %vm1030_vm0, %v1029_v0  ;;  %896 = vmatprep.subr.bf16.mxu0 %v1029_v0 }
  0xa1   : > { %v557_v34 = vsel %vm556_vm8, %v553_v33, %v555_v32  ;;  %902 = vmatprep.subr.bf16.mxu1 %v1029_v0 }
  0xa2   : > { %893 = vmatmul.mubr.msk.bf16.vlgmr.msra.gmra.mrb[8].mxu1 %vm196_vm2, %v175_v31  ;;  %v562_v36 = vsel %vm200_vm1, %v557_v34, 0 }
  0xa3   : > { %904 = vmatprep.mubr.msk.bf16.mxu1 %vm1030_vm0, %v1029_v0 }
  0xa4   : > { %v618_v37 = vpop.permute.xlu1 %617  ;;  %v616_v38 = vpop.permute.xlu0 %615 }
  0xa5   : > { %v620_v39 = vsel %vm619_vm9, %v616_v38, %v618_v37 }
  0xa6   : > { %887 = vmatmul.mubr.msk.bf16.vlgmr.msra.gmra.mrb[8].mxu0 %vm196_vm2, %v174_v35  ;;  %v625_v40 = vsel %vm200_vm1, %v620_v39, 0 }
  0xa7   : > { %897 = vmatpush3.bf16.msra.mxu0 %v562_v36  ;;  %903 = vmatpush3.bf16.msra.mxu1 %v625_v40 }
  0xa8   : > { %v681_v42 = vpop.permute.xlu1 %680  ;;  %v679_v43 = vpop.permute.xlu0 %678  ;;  %898 = vmatprep.mubr.msk.bf16.mxu0 %vm1030_vm0, %v1029_v0  ;;  %908 = vmatprep.subr.bf16.mxu0 %v1029_v0 }
  0xa9   : > { %v683_v44 = vsel %vm682_vm10, %v679_v43, %v681_v42 }
  0xaa   : > { %905 = vmatmul.mubr.msk.bf16.vlgmr.msra.gmra.mrb[12].mxu1 %vm196_vm2, %v177_v41  ;;  %v688_v46 = vsel %vm200_vm1, %v683_v44, 0 }
  0xae   : > { %899 = vmatmul.mubr.msk.bf16.vlgmr.msra.gmra.mrb[12].mxu0 %vm196_vm2, %v176_v45 }
  0xaf   : > { %909 = vmatpush3.bf16.msra.mxu0 %v688_v46  ;;  %910 = vmatprep.mubr.msk.bf16.mxu0 %vm1030_vm0, %v1029_v0 }
  0xb6   : > { %911 = vmatmul.mubr.msk.bf16.vlgmr.msra.gmra.mrb[16].mxu0 %vm196_vm2, %v178_v47 }
  0xb9   : > { %v735_v24 = vpop.permute.xlu0 %734 }
  0xf2   : > { %v284_v48 = vpop.f32.mrb[0].mxu1 }
  0xf3   : > { %v870_v49 = vpop.f32.mrb[1].mxu1 }
  0xf4   : > { %v287_v50 = vpop.f32.mrb[2].mxu1 }
  0xf5   : > { %v871_v51 = vpop.f32.mrb[3].mxu1 }
 0x169   : > { %v238_v52 = vpop.f32.mrb[0].mxu0 }
 0x16a   : > { %v864_v53 = vpop.f32.mrb[1].mxu0  ;;  %v285_v54 = vadd.f32 %v284_v48, %v238_v52 }
 0x16b   : > { %v241_v55 = vpop.f32.mrb[2].mxu0 }
 0x16c   : > { %v865_v56 = vpop.f32.mrb[3].mxu0 }
 0x16d   : > { %v409_v57 = vpop.f32.mrb[4].mxu1 }
 0x16e   : > { %v882_v58 = vpop.f32.mrb[5].mxu1 }
 0x16f   : > { %v412_v59 = vpop.f32.mrb[6].mxu1 }
 0x170   : > { %v883_v60 = vpop.f32.mrb[7].mxu1 }
 0x171   : > { %v346_v61 = vpop.f32.mrb[4].mxu0 }
 0x172   : > { %v352_v62 = vadd.f32 %v346_v61, %v285_v54  ;;  %v876_v63 = vpop.f32.mrb[5].mxu0 }
 0x173   : > { %v349_v0 = vpop.f32.mrb[6].mxu0 }
 0x174   : > { %v415_v1 = vadd.f32 %v409_v57, %v352_v62  ;;  %v877_v2 = vpop.f32.mrb[7].mxu0 }
 0x175   : > { %v535_v3 = vpop.f32.mrb[8].mxu1 }
 0x176   : > { %v894_v4 = vpop.f32.mrb[9].mxu1 }
 0x177   : > { %v538_v5 = vpop.f32.mrb[10].mxu1 }
 0x178   : > { %v895_v6 = vpop.f32.mrb[11].mxu1 }
 0x179   : > { %v472_v7 = vpop.f32.mrb[8].mxu0 }
 0x17a   : > { %v478_v8 = vadd.f32 %v472_v7, %v415_v1  ;;  %v888_v9 = vpop.f32.mrb[9].mxu0 }
 0x17b   : > { %v475_v10 = vpop.f32.mrb[10].mxu0 }
 0x17c   : > { %v541_v11 = vadd.f32 %v535_v3, %v478_v8  ;;  %v889_v12 = vpop.f32.mrb[11].mxu0 }
 0x17d   : > { %v661_v13 = vpop.f32.mrb[12].mxu1 }
 0x17e   : > { %v906_v14 = vpop.f32.mrb[13].mxu1 }
 0x17f   : > { %v664_v15 = vpop.f32.mrb[14].mxu1 }
 0x180   : > { %v907_v16 = vpop.f32.mrb[15].mxu1 }
 0x181   : > { %v598_v17 = vpop.f32.mrb[12].mxu0 }
 0x182   : > { %v604_v18 = vadd.f32 %v598_v17, %v541_v11  ;;  %v900_v19 = vpop.f32.mrb[13].mxu0 }
 0x183   : > { %v601_v20 = vpop.f32.mrb[14].mxu0 }
 0x184   : > { %v667_v21 = vadd.f32 %v661_v13, %v604_v18  ;;  %v901_v22 = vpop.f32.mrb[15].mxu0 }
 0x189   : > { %v724_v23 = vpop.f32.mrb[16].mxu0 }
 0x18a   : > { %v730_v25 = vadd.f32 %v724_v23, %v667_v21  ;;  %v912_v26 = vpop.f32.mrb[17].mxu0 }
 0x18b   : > { %v727_v27 = vpop.f32.mrb[18].mxu0 }
 0x18c   : > { %v737_v28 = vadd.f32 %v735_v24, %v730_v25  ;;  %v913_v29 = vpop.f32.mrb[19].mxu0 }
 0x18e   : > { %v738_v30 = vmax.f32 %v737_v28, 0.0 }
 0x190   : > { %739 = vst [vmem:[%s163_s24] sm:$0xff] %v738_v30 }
 0x191   : > { %978 = shalt.err (!%p975_p3)
}
 0x192   : > { %s979_s6 = scalar_lea.hbm %s1194_s28, 128  ;;  %s983_s9 = scalar_lea.hbm %s1239_s3, 256 }
 0x193   : > { %p980_p4 = scmp.ne.s32.totalorder %s1194_s28, %s979_s6  ;;  %p984_p9 = scmp.lt.u32.totalorder %s1194_s28, %s1239_s3 }
 0x194   : > { %p985_p10 = scmp.lt.u32.totalorder %s983_s9, %s979_s6  ;;  %p987_p12 = scmp.lt.u32.totalorder %s979_s6, %s1194_s28 }
 0x195   : > { %p981_p7 = pnand %p980_p4, %p1099_p5 }
 0x196   : > { %p986_p11 = por %p985_p10, %p984_p9 }
 0x197   : > { %p982_p8 = pneg %p981_p7 }
 0x198   : > { %p988_p13 = por %p987_p12, %p986_p11 }
 0x19a   : > { %p989_p0 = pnand %p988_p13, %p982_p8 }
 0x19c   : > { %992 = shalt.err (!%p989_p0)
}
 0x19d   : > { %914 = dma.vmem_to_hbm [thread:$0]  (%p1099_p5), %s1196_s25, 128, %s1194_s28, %s741_s29  }
 0x19e PF: > { %p920_p1 = scmp.ge.s32.totalorder %s1027_s15, 2  ;;  %s766_s17 = sand.u32 1, %s1015_s12  }
 0x19f   : > { %s767_s19 = scalar_lea.sflag [#allocation3], %s766_s17 }
 0x1a0   : > { %p917_p2 = pnand %p920_p1, %p1103_p6 }
 0x1a2   : > { %1010 = dma.done.wait (!%p917_p2), %s767_s19, 128  }
 0x1a3   : > { %1012 = vsyncadd (!%p917_p2), %s767_s19, 4294967168  ;;  %p13_p3 = scmp.ge.s32.totalorder %s1086_s18, 4   ;;  %s1242_s12 = smov %s1019_s13 }
 0x1a4   : > { %s1243_s13 = smov %s1023_s14  ;;  %s1244_s14 = smov %s1097_s21 }
 0x1a5   : > { %s1245_s15 = smov %s1086_s18  ;;  %15 = sbr.rel (!%p13_p3) target bundleno = 3 (0x3), region = 67 }
 0x1ac   :  { %772 = vsyncpa [#allocation3], 1 }
 0x1ad   :  { %774 = vsyncpa [#allocation3 + $0x1], 1 }

</bundles_post_ra>
